<compile_context>
chip_gen: v6e
topology: v6e:2x2x1
jax: 0.10.0
libtpu: 0.0.40
codegen_flags: <defaults>
</compile_context>

<pallas_src>
import functools

import jax
import jax.numpy as jnp
import numpy as np
from jax import lax
from jax.experimental import pallas as pl
from jax.experimental.pallas import tpu as pltpu


# --------------------------------------------------------------------------
# In-kernel helpers
# --------------------------------------------------------------------------
def _l2norm(v):
    """F.normalize(v, dim=-1, p=2) with eps=1e-12 (rsqrt -> EUP slot)."""
    ssq = jnp.sum(v * v, axis=-1, keepdims=True)
    return v * lax.rsqrt(jnp.maximum(ssq, 1e-24))


def _layer_tail(x, adj_col, w_i1, w_i2, *, k_real, mm_dtype, approx_recip):
    """Per-layer math after x = adjacency @ (emb @ W_item[i]).

    Returns (h, new_emb).  All matmul operands are cast to mm_dtype with f32
    accumulation; elementwise math stays f32.
    """
    if approx_recip:
        recip = lambda v: pl.reciprocal(v, approx=True)   # EUP, bf16 fast path
    else:
        recip = lambda v: 1.0 / v                         # exact, f32 path

    k_pad = w_i2.shape[-1]

    # H1 = relu(W_i1(x) + x); H1 = W_i2(H1); softmax over the (padded) K axis.
    h1 = jnp.dot(x.astype(mm_dtype), w_i1, preferred_element_type=jnp.float32) + x
    h1 = jnp.maximum(h1, 0.0)
    h1 = jnp.dot(h1.astype(mm_dtype), w_i2, preferred_element_type=jnp.float32)  # (N, k_pad)
    if k_pad != k_real:
        # Padded w_i2 columns give zero logits -> mask them to -1e30 so their
        # softmax weight is exactly 0 (keeps rowsum/colsum/hk/h exact).
        col = lax.broadcasted_iota(jnp.int32, (1, k_pad), 1)
        h1 = h1 + jnp.where(col < k_real, 0.0, -1e30).astype(jnp.float32)
    h1 = h1 - jnp.max(h1, axis=1, keepdims=True)
    e = jnp.exp(h1)
    h1 = e * recip(jnp.sum(e, axis=1, keepdims=True))      # row softmax; padded cols == 0

    # h = H1.T * adj ; h = h / sum(h, dim=0) ; h = h @ x ; h = H1 @ h
    # colsum over K of (H1.T * adj) = adj * rowsum(H1); the net per-row factor
    # applied to x is adj / colsum.
    rowsum = jnp.sum(h1, axis=1, keepdims=True)             # (N, 1)
    scale = adj_col * recip(adj_col * rowsum)                # (N, 1)
    weighted = x * scale                                     # (N, d_p)
    # Lane-dense now that K is padded to 128: (k_pad, N) x (N, d_p) MXU matmul.
    hk = lax.dot_general(h1.astype(mm_dtype), weighted.astype(mm_dtype),
                         (((0,), (0,)), ((), ())),
                         preferred_element_type=jnp.float32)  # (k_pad, d_p)
    h = jnp.dot(h1.astype(mm_dtype), hk.astype(mm_dtype),
                preferred_element_type=jnp.float32)           # (N, d_p)
    return h, h + x


def _accumulate_and_finalize(i, n_layers, out_emb_ref, out_hs_ref, emb_carry,
                             h, new_emb):
    out_emb_ref[...] = out_emb_ref[...] + _l2norm(new_emb)
    out_hs_ref[...] = out_hs_ref[...] + _l2norm(h)
    emb_carry[...] = new_emb

    @pl.when(i == n_layers - 1)
    def _finalize():
        out_emb_ref[...] = out_emb_ref[...] * (1.0 / (n_layers + 1.0))
        out_hs_ref[...] = out_hs_ref[...] * (1.0 / n_layers)


# --------------------------------------------------------------------------
# Kernels (one grid step == one GNN layer; outputs are running accumulators)
# --------------------------------------------------------------------------
def _itemconv_kernel_resident(w_item_ref, emb0_ref, a_ref, adj_ref, w_i1_ref,
                              w_i2_ref, out_emb_ref, out_hs_ref, emb_carry,
                              *, k_real, approx_recip):
    i = pl.program_id(0)
    n_layers = pl.num_programs(0)
    mm_dtype = w_item_ref.dtype

    @pl.when(i == 0)
    def _init():
        emb0 = emb0_ref[...]
        emb_carry[...] = emb0
        out_emb_ref[...] = emb0                 # final = [item_embedding_layer0]
        out_hs_ref[...] = jnp.zeros_like(out_hs_ref)

    emb = emb_carry[...]                        # (N, d_p) f32 carried state
    x = jnp.dot(emb.astype(mm_dtype), w_item_ref[...],
                preferred_element_type=jnp.float32)
    x = jnp.dot(a_ref[...], x.astype(mm_dtype),
                preferred_element_type=jnp.float32)          # adjacency @ x

    h, new_emb = _layer_tail(x, adj_ref[...], w_i1_ref[...], w_i2_ref[...],
                             k_real=k_real, mm_dtype=mm_dtype,
                             approx_recip=approx_recip)
    _accumulate_and_finalize(i, n_layers, out_emb_ref, out_hs_ref, emb_carry,
                             h, new_emb)


def _itemconv_kernel_streamed(w_item_ref, emb0_ref, a_hbm_ref, adj_ref, w_i1_ref,
                              w_i2_ref, out_emb_ref, out_hs_ref,
                              emb_carry, ax_ref, abuf, dma_sem,
                              *, k_real, approx_recip, row_tile, n_row_tiles):
    """Adjacency stays in HBM; row tiles are streamed with double-buffered DMA."""
    i = pl.program_id(0)
    n_layers = pl.num_programs(0)
    mm_dtype = w_item_ref.dtype

    @pl.when(i == 0)
    def _init():
        emb0 = emb0_ref[...]
        emb_carry[...] = emb0
        out_emb_ref[...] = emb0
        out_hs_ref[...] = jnp.zeros_like(out_hs_ref)

    emb = emb_carry[...]
    x_pre = jnp.dot(emb.astype(mm_dtype), w_item_ref[...],
                    preferred_element_type=jnp.float32)       # emb @ W_item[i]
    x_pre_mm = x_pre.astype(mm_dtype)                          # hoisted, loop-invariant

    def _copy(t, slot):
        return pltpu.make_async_copy(
            a_hbm_ref.at[pl.ds(t * row_tile, row_tile), :],
            abuf.at[slot], dma_sem.at[slot])

    _copy(0, 0).start()                                        # prime slot 0

    def _body(t, carry):
        slot = t % 2
        _copy(t, slot).wait()

        @pl.when(t + 1 < n_row_tiles)
        def _prefetch():
            _copy(t + 1, 1 - slot).start()

        r0 = pl.multiple_of(t * row_tile, row_tile)
        ax_ref[pl.ds(r0, row_tile), :] = jnp.dot(
            abuf[slot], x_pre_mm, preferred_element_type=jnp.float32)
        return carry

    lax.fori_loop(0, n_row_tiles, _body, 0)

    x = ax_ref[...]                                            # adjacency @ x, assembled
    h, new_emb = _layer_tail(x, adj_ref[...], w_i1_ref[...], w_i2_ref[...],
                             k_real=k_real, mm_dtype=mm_dtype,
                             approx_recip=approx_recip)
    _accumulate_and_finalize(i, n_layers, out_emb_ref, out_hs_ref, emb_carry,
                             h, new_emb)


# --------------------------------------------------------------------------
# Wrapper
# --------------------------------------------------------------------------
def _round_up(x, m):
    return ((x + m - 1) // m) * m


def _auto_vmem_limit():
    """~75% of chip VMEM (capped), leaving headroom for the in-kernel
    temporaries (x, weighted, new_emb, l2norm intermediates ~ 3-4 x (N,d_p) f32
    live at once) and the compiler's internal scratch."""
    try:
        cap = getattr(pltpu.get_tpu_info(), "vmem_capacity_bytes", None)
        if cap and cap >= (64 << 20):
            return min(int(cap * 3 // 4), 100 << 20)
    except Exception:
        pass
    return None


def itemconv_forward(adj_vec, adjacency, embedding, w_item_stack_t, w_i1_t, w_i2_t,
                     *, matmul_dtype=jnp.bfloat16, stream_adjacency=None,
                     row_tile=None, vmem_limit_bytes=None):
    """ItemConv.forward as a Pallas TPU kernel.

    adj_vec: (N,)           -- `adj` in the PyTorch module
    adjacency: (N, N) dense -- row-normalized adjacency (sparse mm done densely)
    embedding: (N, d)
    w_item_stack_t: (layers, d, d) pre-transposed to (in, out)
    w_i1_t: (d, d), w_i2_t: (d, K) pre-transposed to (in, out)
    matmul_dtype: operand dtype for ALL matmuls (f32 accumulation). bf16 default.
    stream_adjacency: None=auto (stream when A is large); True keeps A in HBM
        and streams row tiles; False keeps A resident in VMEM.
    vmem_limit_bytes: int, None, or "auto" (derive from pltpu.get_tpu_info()).
    """
    layers, d, _ = w_item_stack_t.shape
    N = embedding.shape[0]
    K = w_i2_t.shape[1]

    # Lane-dense padding: feature dim and channel dim K both to multiples of 128.
    d_p = _round_up(d, 128)
    k_p = _round_up(K, 128)
    pd, pk = d_p - d, k_p - K
    embedding = jnp.pad(embedding, ((0, 0), (0, pd)))
    w_item_stack_t = jnp.pad(w_item_stack_t, ((0, 0), (0, pd), (0, pd)))
    w_i1_t = jnp.pad(w_i1_t, ((0, pd), (0, pd)))
    w_i2_t = jnp.pad(w_i2_t, ((0, pd), (0, pk)))

    adj_col = adj_vec.reshape(N, 1).astype(jnp.float32)
    emb_f32 = embedding.astype(jnp.float32)
    a_mm = adjacency.astype(matmul_dtype)
    w_item_mm = w_item_stack_t.astype(matmul_dtype)
    w_i1_mm = w_i1_t.astype(matmul_dtype)
    w_i2_mm = w_i2_t.astype(matmul_dtype)

    approx_recip = np.dtype(matmul_dtype) == np.dtype(jnp.bfloat16)

    a_bytes = N * N * np.dtype(matmul_dtype).itemsize
    if stream_adjacency is None:
        stream_adjacency = a_bytes > (8 << 20)     # keep A resident only when small

    if vmem_limit_bytes == "auto":
        vmem_limit_bytes = _auto_vmem_limit()

    invariant = dict(pipeline_mode=pl.Buffered(1))  # grid-invariant: single buffer
    in_specs = [
        # Per-layer weight: only block whose index depends on i -> default
        # double buffering.  Squeezed() drops the size-1 layer axis.
        pl.BlockSpec((pl.Squeezed(), d_p, d_p), lambda i: (i, 0, 0)),
        pl.BlockSpec((N, d_p), lambda i: (0, 0), **invariant),
        None,                                       # adjacency, filled below
        pl.BlockSpec((N, 1), lambda i: (0, 0), **invariant),
        pl.BlockSpec((d_p, d_p), lambda i: (0, 0), **invariant),
        pl.BlockSpec((d_p, k_p), lambda i: (0, 0), **invariant),
    ]
    scratch = [pltpu.VMEM((N, d_p), jnp.float32)]   # carried item embedding

    if stream_adjacency:
        if row_tile is None:
            row_tile = 512 if (N >= 512 and N % 512 == 0) else N
        assert N % row_tile == 0, "row_tile must divide N"
        n_row_tiles = N // row_tile
        in_specs[2] = pl.BlockSpec(memory_space=pl.ANY)            # A stays in HBM
        scratch += [
            pltpu.VMEM((N, d_p), jnp.float32),                     # A @ x assembly
            pltpu.VMEM((2, row_tile, N), matmul_dtype),            # A row-tile dbl buffer
            pltpu.SemaphoreType.DMA((2,)),
        ]
        kernel = functools.partial(_itemconv_kernel_streamed, k_real=K,
                                   approx_recip=approx_recip,
                                   row_tile=row_tile, n_row_tiles=n_row_tiles)
    else:
        in_specs[2] = pl.BlockSpec((N, N), lambda i: (0, 0), **invariant)
        kernel = functools.partial(_itemconv_kernel_resident, k_real=K,
                                   approx_recip=approx_recip)

    grid_spec = pltpu.PrefetchScalarGridSpec(
        num_scalar_prefetch=0,
        grid=(layers,),
        in_specs=in_specs,
        out_specs=[
            # Constant block index across the layer axis -> VMEM-resident
            # accumulators, written back to HBM once at the end of the grid.
            pl.BlockSpec((N, d_p), lambda i: (0, 0)),
            pl.BlockSpec((N, d_p), lambda i: (0, 0)),
        ],
        scratch_shapes=scratch,
    )

    cp_kwargs = dict(dimension_semantics=("arbitrary",))   # layer axis carries state
    if vmem_limit_bytes:
        cp_kwargs["vmem_limit_bytes"] = int(vmem_limit_bytes)

    out_emb, out_hs = pl.pallas_call(
        kernel,
        out_shape=(jax.ShapeDtypeStruct((N, d_p), jnp.float32),
                   jax.ShapeDtypeStruct((N, d_p), jnp.float32)),
        grid_spec=grid_spec,
        compiler_params=pltpu.CompilerParams(**cp_kwargs),
    )(w_item_mm, emb_f32, a_mm, adj_col, w_i1_mm, w_i2_mm)

    return out_emb[:, :d], out_hs[:, :d]


# --------------------------------------------------------------------------
# Host-side float64 reference (mirrors the PyTorch forward exactly)
# --------------------------------------------------------------------------
def itemconv_ref_np(adj_vec, adjacency, embedding, w_item, w_i1, w_i2, layers):
    x = np.asarray(embedding, np.float64)
    A = np.asarray(adjacency, np.float64)
    adj = np.asarray(adj_vec, np.float64)
    Wit = np.asarray(w_item, np.float64)
    W1 = np.asarray(w_i1, np.float64)
    W2 = np.asarray(w_i2, np.float64)
    final, finalh = [x], []
    for i in range(layers):
        x = x @ Wit[i].T
        x = A @ x
        H1 = x @ W1.T + x
        H1 = np.maximum(H1, 0.0)
        H1 = H1 @ W2.T
        H1 = H1 - H1.max(axis=1, keepdims=True)
        e = np.exp(H1)
        H1 = e / e.sum(axis=1, keepdims=True)
        h = H1.T * adj                        # (K, N)
        h = h / h.sum(axis=0)                 # column-normalize
        h = h @ x                             # (K, d)
        h = H1 @ h                            # (N, d)
        x = h + x
        final.append(x / np.maximum(np.linalg.norm(x, axis=-1, keepdims=True), 1e-12))
        finalh.append(h / np.maximum(np.linalg.norm(h, axis=-1, keepdims=True), 1e-12))
    return sum(final) / (layers + 1), sum(finalh) / layers


# --------------------------------------------------------------------------
# Self-test
# --------------------------------------------------------------------------
if __name__ == "__main__":
    N = 16            # number of items (nodes)
    emb_size = 32
    layers = 2
    K1 = 8            # channel 0 -> K = K1
    key = jax.random.PRNGKey(0)
    k_emb, k_adj, k_adjv, k_wit, k_wi1, k_wi2 = jax.random.split(key, 6)

    embedding = jax.random.normal(k_emb, (N, emb_size), dtype=jnp.float32) * 0.1
    A = jax.random.uniform(k_adj, (N, N), dtype=jnp.float32)
    adjacency = A / jnp.sum(A, axis=1, keepdims=True)          # dense row-normalized
    adj_vec = jax.random.uniform(k_adjv, (N,), dtype=jnp.float32) + 0.5

    # nn.Linear weights in PyTorch (out, in) layout, deterministic init.
    w_item = jax.random.normal(k_wit, (layers, emb_size, emb_size),
                               dtype=jnp.float32) * 0.1
    w_i1 = jax.random.normal(k_wi1, (emb_size, emb_size), dtype=jnp.float32) * 0.1
    w_i2 = jax.random.normal(k_wi2, (K1, emb_size), dtype=jnp.float32) * 0.1

    # Pre-transpose to (in, out) for the kernel (x @ W).
    w_item_t = jnp.transpose(w_item, (0, 2, 1))
    w_i1_t = w_i1.T
    w_i2_t = w_i2.T

    ref_emb, ref_hs = itemconv_ref_np(adj_vec, adjacency, embedding,
                                      w_item, w_i1, w_i2, layers)

    # 1) f32 matmul operands, adjacency resident in VMEM (tight check).
    o_emb, o_hs = itemconv_forward(adj_vec, adjacency, embedding, w_item_t,
                                   w_i1_t, w_i2_t, matmul_dtype=jnp.float32,
                                   stream_adjacency=False)
    jax.block_until_ready((o_emb, o_hs))
    np.testing.assert_allclose(np.asarray(o_emb), ref_emb, rtol=1e-2, atol=5e-3)
    np.testing.assert_allclose(np.asarray(o_hs), ref_hs, rtol=1e-2, atol=5e-3)

    # 2) f32, adjacency streamed from HBM (exercises the manual-DMA path).
    s_emb, s_hs = itemconv_forward(adj_vec, adjacency, embedding, w_item_t,
                                   w_i1_t, w_i2_t, matmul_dtype=jnp.float32,
                                   stream_adjacency=True)
    jax.block_until_ready((s_emb, s_hs))
    np.testing.assert_allclose(np.asarray(s_emb), ref_emb, rtol=1e-2, atol=5e-3)
    np.testing.assert_allclose(np.asarray(s_hs), ref_hs, rtol=1e-2, atol=5e-3)

    # 3) bf16 matmul operands everywhere (default fast path), resident A.
    b_emb, b_hs = itemconv_forward(adj_vec, adjacency, embedding, w_item_t,
                                   w_i1_t, w_i2_t, stream_adjacency=False)
    jax.block_until_ready((b_emb, b_hs))
    np.testing.assert_allclose(np.asarray(b_emb), ref_emb, rtol=5e-2, atol=5e-2)
    np.testing.assert_allclose(np.asarray(b_hs), ref_hs, rtol=5e-2, atol=5e-2)

    # 4) bf16 + HBM-streamed adjacency + auto VMEM budget (v7x-friendly config).
    v_emb, v_hs = itemconv_forward(adj_vec, adjacency, embedding, w_item_t,
                                   w_i1_t, w_i2_t, stream_adjacency=True,
                                   vmem_limit_bytes="auto")
    jax.block_until_ready((v_emb, v_hs))
    np.testing.assert_allclose(np.asarray(v_emb), ref_emb, rtol=5e-2, atol=5e-2)
    np.testing.assert_allclose(np.asarray(v_hs), ref_hs, rtol=5e-2, atol=5e-2)

    print("KERNEL_OK")
</pallas_src>

<mosaic_0001>
module attributes {stable_mosaic.version = 11 : i64} {
  func.func @_itemconv_kernel_resident(%arg0: i32, %arg1: memref<1x128x128xf32, #tpu.memory_space<vmem>>, %arg2: memref<16x128xf32, #tpu.memory_space<vmem>>, %arg3: memref<16x16xf32, #tpu.memory_space<vmem>>, %arg4: memref<16x1xf32, #tpu.memory_space<vmem>>, %arg5: memref<128x128xf32, #tpu.memory_space<vmem>>, %arg6: memref<128x128xf32, #tpu.memory_space<vmem>>, %arg7: memref<16x128xf32, #tpu.memory_space<vmem>>, %arg8: memref<16x128xf32, #tpu.memory_space<vmem>>, %arg9: memref<16x128xf32, #tpu.memory_space<vmem>>) attributes {dimension_semantics = [#tpu.dimension_semantics<arbitrary>], iteration_bounds = array<i64: 2>, scalar_prefetch = 0 : i64, scratch_operands = 1 : i64, tpu.core_type = #tpu.core_type<tc>, window_params = [{transform_indices = @transform_0, window_bounds = array<i64: 1, 128, 128>}, {pipeline_mode = #tpu.pipeline_mode<synchronous>, transform_indices = @transform_1, window_bounds = array<i64: 16, 128>}, {pipeline_mode = #tpu.pipeline_mode<synchronous>, transform_indices = @transform_2, window_bounds = array<i64: 16, 16>}, {pipeline_mode = #tpu.pipeline_mode<synchronous>, transform_indices = @transform_3, window_bounds = array<i64: 16, 1>}, {pipeline_mode = #tpu.pipeline_mode<synchronous>, transform_indices = @transform_4, window_bounds = array<i64: 128, 128>}, {pipeline_mode = #tpu.pipeline_mode<synchronous>, transform_indices = @transform_5, window_bounds = array<i64: 128, 128>}, {pipeline_mode = #tpu.pipeline_mode<synchronous>, transform_indices = @transform_6, window_bounds = array<i64: 16, 128>}, {pipeline_mode = #tpu.pipeline_mode<synchronous>, transform_indices = @transform_7, window_bounds = array<i64: 16, 128>}]} {
    %c0_i32 = arith.constant 0 : i32
    %0 = arith.cmpi eq, %arg0, %c0_i32 : i32
    %1 = arith.extui %0 : i1 to i32
    %c0_i32_0 = arith.constant 0 : i32
    %2 = arith.cmpi ne, %1, %c0_i32_0 : i32
    scf.if %2 {
      %c0_41 = arith.constant 0 : index
      %c0_42 = arith.constant 0 : index
      %73 = vector.load %arg2[%c0_41, %c0_42] : memref<16x128xf32, #tpu.memory_space<vmem>>, vector<16x128xf32>
      %c0_43 = arith.constant 0 : index
      %c0_44 = arith.constant 0 : index
      %74 = vector.load %arg9[%c0_43, %c0_44] : memref<16x128xf32, #tpu.memory_space<vmem>>, vector<16x128xf32>
      tpu.vector_store %arg9[%c0_43, %c0_44], %73 {strides = array<i32>} : memref<16x128xf32, #tpu.memory_space<vmem>>, vector<16x128xf32>,
      %c0_45 = arith.constant 0 : index
      %c0_46 = arith.constant 0 : index
      %75 = vector.load %arg7[%c0_45, %c0_46] : memref<16x128xf32, #tpu.memory_space<vmem>>, vector<16x128xf32>
      tpu.vector_store %arg7[%c0_45, %c0_46], %73 {strides = array<i32>} : memref<16x128xf32, #tpu.memory_space<vmem>>, vector<16x128xf32>,
      %cst_47 = arith.constant 0.000000e+00 : f32
      %76 = vector.broadcast %cst_47 : f32 to vector<16x128xf32>
      %c0_48 = arith.constant 0 : index
      %c0_49 = arith.constant 0 : index
      %77 = vector.load %arg8[%c0_48, %c0_49] : memref<16x128xf32, #tpu.memory_space<vmem>>, vector<16x128xf32>
      tpu.vector_store %arg8[%c0_48, %c0_49], %76 {strides = array<i32>} : memref<16x128xf32, #tpu.memory_space<vmem>>, vector<16x128xf32>,
    } else {
    }
    %c0 = arith.constant 0 : index
    %c0_1 = arith.constant 0 : index
    %3 = vector.load %arg9[%c0, %c0_1] : memref<16x128xf32, #tpu.memory_space<vmem>>, vector<16x128xf32>
    %c0_2 = arith.constant 0 : index
    %c0_3 = arith.constant 0 : index
    %c0_4 = arith.constant 0 : index
    %4 = vector.load %arg1[%c0_2, %c0_3, %c0_4] : memref<1x128x128xf32, #tpu.memory_space<vmem>>, vector<1x128x128xf32>
    %5 = vector.shape_cast %4 : vector<1x128x128xf32> to vector<128x128xf32>
    %cst = arith.constant dense<0.000000e+00> : vector<16x128xf32>
    %6 = tpu.matmul %3, %5, %cst {dimension_numbers = #tpu.dot_dimension_numbers<[1], [0], [0], [1], [0, 0, 1, 1], [], []>} : vector<16x128xf32>, vector<128x128xf32>, vector<16x128xf32> -> vector<16x128xf32>
    %c0_5 = arith.constant 0 : index
    %c0_6 = arith.constant 0 : index
    %7 = vector.load %arg3[%c0_5, %c0_6] : memref<16x16xf32, #tpu.memory_space<vmem>>, vector<16x16xf32>
    %cst_7 = arith.constant dense<0.000000e+00> : vector<16x128xf32>
    %8 = tpu.matmul %7, %6, %cst_7 {dimension_numbers = #tpu.dot_dimension_numbers<[1], [0], [0], [1], [0, 0, 1, 1], [], []>} : vector<16x16xf32>, vector<16x128xf32>, vector<16x128xf32> -> vector<16x128xf32>
    %c0_8 = arith.constant 0 : index
    %c0_9 = arith.constant 0 : index
    %9 = vector.load %arg4[%c0_8, %c0_9] : memref<16x1xf32, #tpu.memory_space<vmem>>, vector<16x1xf32>
    %c0_10 = arith.constant 0 : index
    %c0_11 = arith.constant 0 : index
    %10 = vector.load %arg5[%c0_10, %c0_11] : memref<128x128xf32, #tpu.memory_space<vmem>>, vector<128x128xf32>
    %c0_12 = arith.constant 0 : index
    %c0_13 = arith.constant 0 : index
    %11 = vector.load %arg6[%c0_12, %c0_13] : memref<128x128xf32, #tpu.memory_space<vmem>>, vector<128x128xf32>
    %cst_14 = arith.constant dense<0.000000e+00> : vector<16x128xf32>
    %12 = tpu.matmul %8, %10, %cst_14 {dimension_numbers = #tpu.dot_dimension_numbers<[1], [0], [0], [1], [0, 0, 1, 1], [], []>} : vector<16x128xf32>, vector<128x128xf32>, vector<16x128xf32> -> vector<16x128xf32>
    %13 = arith.addf %12, %8 : vector<16x128xf32>
    %cst_15 = arith.constant 0.000000e+00 : f32
    %14 = vector.broadcast %cst_15 : f32 to vector<16x128xf32>
    %15 = arith.maximumf %13, %14 : vector<16x128xf32>
    %cst_16 = arith.constant dense<0.000000e+00> : vector<16x128xf32>
    %16 = tpu.matmul %15, %11, %cst_16 {dimension_numbers = #tpu.dot_dimension_numbers<[1], [0], [0], [1], [0, 0, 1, 1], [], []>} : vector<16x128xf32>, vector<128x128xf32>, vector<16x128xf32> -> vector<16x128xf32>
    %17 = tpu.iota {dimensions = array<i32: 1>} : vector<1x128xi32>
    %c8_i32 = arith.constant 8 : i32
    %18 = vector.broadcast %c8_i32 : i32 to vector<1x128xi32>
    %19 = arith.cmpi slt, %17, %18 : vector<1x128xi32>
    %cst_17 = arith.constant 0.000000e+00 : f32
    %cst_18 = arith.constant -1.000000e+30 : f32
    %20 = vector.broadcast %cst_17 : f32 to vector<1x128xf32>
    %21 = vector.broadcast %cst_18 : f32 to vector<1x128xf32>
    %22 = arith.select %19, %20, %21 : vector<1x128xi1>, vector<1x128xf32>
    %23 = vector.broadcast %22 : vector<1x128xf32> to vector<16x128xf32>
    %24 = arith.addf %16, %23 : vector<16x128xf32>
    %cst_19 = arith.constant dense<0xFF800000> : vector<16xf32>
    %25 = vector.multi_reduction <maximumf>, %24, %cst_19 [1] : vector<16x128xf32> to vector<16xf32>
    %26 = vector.shape_cast %25 : vector<16xf32> to vector<16x1xf32>
    %27 = vector.broadcast %26 : vector<16x1xf32> to vector<16x128xf32>
    %28 = arith.subf %24, %27 : vector<16x128xf32>
    %29 = math.exp %28 : vector<16x128xf32>
    %cst_20 = arith.constant dense<0.000000e+00> : vector<16xf32>
    %30 = vector.multi_reduction <add>, %29, %cst_20 [1] : vector<16x128xf32> to vector<16xf32>
    %31 = vector.shape_cast %30 : vector<16xf32> to vector<16x1xf32>
    %cst_21 = arith.constant 1.000000e+00 : f32
    %32 = vector.broadcast %cst_21 : f32 to vector<16x1xf32>
    %33 = arith.divf %32, %31 : vector<16x1xf32>
    %34 = vector.broadcast %33 : vector<16x1xf32> to vector<16x128xf32>
    %35 = arith.mulf %29, %34 : vector<16x128xf32>
    %cst_22 = arith.constant dense<0.000000e+00> : vector<16xf32>
    %36 = vector.multi_reduction <add>, %35, %cst_22 [1] : vector<16x128xf32> to vector<16xf32>
    %37 = vector.shape_cast %36 : vector<16xf32> to vector<16x1xf32>
    %38 = arith.mulf %9, %37 : vector<16x1xf32>
    %cst_23 = arith.constant 1.000000e+00 : f32
    %39 = vector.broadcast %cst_23 : f32 to vector<16x1xf32>
    %40 = arith.divf %39, %38 : vector<16x1xf32>
    %41 = arith.mulf %9, %40 : vector<16x1xf32>
    %42 = vector.broadcast %41 : vector<16x1xf32> to vector<16x128xf32>
    %43 = arith.mulf %8, %42 : vector<16x128xf32>
    %cst_24 = arith.constant dense<0.000000e+00> : vector<128x128xf32>
    %44 = tpu.matmul %35, %43, %cst_24 {dimension_numbers = #tpu.dot_dimension_numbers<[0], [0], [1], [1], [0, 1, 1, 1], [], []>} : vector<16x128xf32>, vector<16x128xf32>, vector<128x128xf32> -> vector<128x128xf32>
    %cst_25 = arith.constant dense<0.000000e+00> : vector<16x128xf32>
    %45 = tpu.matmul %35, %44, %cst_25 {dimension_numbers = #tpu.dot_dimension_numbers<[1], [0], [0], [1], [0, 0, 1, 1], [], []>} : vector<16x128xf32>, vector<128x128xf32>, vector<16x128xf32> -> vector<16x128xf32>
    %46 = arith.addf %45, %8 : vector<16x128xf32>
    %c0_26 = arith.constant 0 : index
    %c0_27 = arith.constant 0 : index
    %47 = vector.load %arg7[%c0_26, %c0_27] : memref<16x128xf32, #tpu.memory_space<vmem>>, vector<16x128xf32>
    %48 = arith.mulf %46, %46 : vector<16x128xf32>
    %cst_28 = arith.constant dense<0.000000e+00> : vector<16xf32>
    %49 = vector.multi_reduction <add>, %48, %cst_28 [1] : vector<16x128xf32> to vector<16xf32>
    %50 = vector.shape_cast %49 : vector<16xf32> to vector<16x1xf32>
    %cst_29 = arith.constant 1.000000e-24 : f32
    %51 = vector.broadcast %cst_29 : f32 to vector<16x1xf32>
    %52 = arith.maximumf %50, %51 : vector<16x1xf32>
    %53 = math.rsqrt %52 : vector<16x1xf32>
    %54 = vector.broadcast %53 : vector<16x1xf32> to vector<16x128xf32>
    %55 = arith.mulf %46, %54 : vector<16x128xf32>
    %56 = arith.addf %47, %55 : vector<16x128xf32>
    %c0_30 = arith.constant 0 : index
    %c0_31 = arith.constant 0 : index
    %57 = vector.load %arg7[%c0_30, %c0_31] : memref<16x128xf32, #tpu.memory_space<vmem>>, vector<16x128xf32>
    tpu.vector_store %arg7[%c0_30, %c0_31], %56 {strides = array<i32>} : memref<16x128xf32, #tpu.memory_space<vmem>>, vector<16x128xf32>,
    %c0_32 = arith.constant 0 : index
    %c0_33 = arith.constant 0 : index
    %58 = vector.load %arg8[%c0_32, %c0_33] : memref<16x128xf32, #tpu.memory_space<vmem>>, vector<16x128xf32>
    %59 = arith.mulf %45, %45 : vector<16x128xf32>
    %cst_34 = arith.constant dense<0.000000e+00> : vector<16xf32>
    %60 = vector.multi_reduction <add>, %59, %cst_34 [1] : vector<16x128xf32> to vector<16xf32>
    %61 = vector.shape_cast %60 : vector<16xf32> to vector<16x1xf32>
    %cst_35 = arith.constant 1.000000e-24 : f32
    %62 = vector.broadcast %cst_35 : f32 to vector<16x1xf32>
    %63 = arith.maximumf %61, %62 : vector<16x1xf32>
    %64 = math.rsqrt %63 : vector<16x1xf32>
    %65 = vector.broadcast %64 : vector<16x1xf32> to vector<16x128xf32>
    %66 = arith.mulf %45, %65 : vector<16x128xf32>
    %67 = arith.addf %58, %66 : vector<16x128xf32>
    %c0_36 = arith.constant 0 : index
    %c0_37 = arith.constant 0 : index
    %68 = vector.load %arg8[%c0_36, %c0_37] : memref<16x128xf32, #tpu.memory_space<vmem>>, vector<16x128xf32>
    tpu.vector_store %arg8[%c0_36, %c0_37], %67 {strides = array<i32>} : memref<16x128xf32, #tpu.memory_space<vmem>>, vector<16x128xf32>,
    %c0_38 = arith.constant 0 : index
    %c0_39 = arith.constant 0 : index
    %69 = vector.load %arg9[%c0_38, %c0_39] : memref<16x128xf32, #tpu.memory_space<vmem>>, vector<16x128xf32>
    tpu.vector_store %arg9[%c0_38, %c0_39], %46 {strides = array<i32>} : memref<16x128xf32, #tpu.memory_space<vmem>>, vector<16x128xf32>,
    %c1_i32 = arith.constant 1 : i32
    %70 = arith.cmpi eq, %arg0, %c1_i32 : i32
    %71 = arith.extui %70 : i1 to i32
    %c0_i32_40 = arith.constant 0 : i32
    %72 = arith.cmpi ne, %71, %c0_i32_40 : i32
    scf.if %72 {
      %c0_41 = arith.constant 0 : index
      %c0_42 = arith.constant 0 : index
      %73 = vector.load %arg7[%c0_41, %c0_42] : memref<16x128xf32, #tpu.memory_space<vmem>>, vector<16x128xf32>
      %cst_43 = arith.constant 0.333333343 : f32
      %74 = vector.broadcast %cst_43 : f32 to vector<16x128xf32>
      %75 = arith.mulf %73, %74 : vector<16x128xf32>
      %c0_44 = arith.constant 0 : index
      %c0_45 = arith.constant 0 : index
      %76 = vector.load %arg7[%c0_44, %c0_45] : memref<16x128xf32, #tpu.memory_space<vmem>>, vector<16x128xf32>
      tpu.vector_store %arg7[%c0_44, %c0_45], %75 {strides = array<i32>} : memref<16x128xf32, #tpu.memory_space<vmem>>, vector<16x128xf32>,
      %c0_46 = arith.constant 0 : index
      %c0_47 = arith.constant 0 : index
      %77 = vector.load %arg8[%c0_46, %c0_47] : memref<16x128xf32, #tpu.memory_space<vmem>>, vector<16x128xf32>
      %cst_48 = arith.constant 5.000000e-01 : f32
      %78 = vector.broadcast %cst_48 : f32 to vector<16x128xf32>
      %79 = arith.mulf %77, %78 : vector<16x128xf32>
      %c0_49 = arith.constant 0 : index
      %c0_50 = arith.constant 0 : index
      %80 = vector.load %arg8[%c0_49, %c0_50] : memref<16x128xf32, #tpu.memory_space<vmem>>, vector<16x128xf32>
      tpu.vector_store %arg8[%c0_49, %c0_50], %79 {strides = array<i32>} : memref<16x128xf32, #tpu.memory_space<vmem>>, vector<16x128xf32>,
    } else {
    }
    return
  }
  func.func @transform_0(%arg0: i32) -> (i32, i32, i32) {
    %c0_i32 = arith.constant 0 : i32
    %c0_i32_0 = arith.constant 0 : i32
    %c0_i32_1 = arith.constant 0 : i32
    return %arg0, %c0_i32, %c0_i32_0 : i32, i32, i32
  }
  func.func @transform_1(%arg0: i32) -> (i32, i32) {
    %c0_i32 = arith.constant 0 : i32
    %c0_i32_0 = arith.constant 0 : i32
    %c0_i32_1 = arith.constant 0 : i32
    return %c0_i32, %c0_i32_0 : i32, i32
  }
  func.func @transform_2(%arg0: i32) -> (i32, i32) {
    %c0_i32 = arith.constant 0 : i32
    %c0_i32_0 = arith.constant 0 : i32
    %c0_i32_1 = arith.constant 0 : i32
    return %c0_i32, %c0_i32_0 : i32, i32
  }
  func.func @transform_3(%arg0: i32) -> (i32, i32) {
    %c0_i32 = arith.constant 0 : i32
    %c0_i32_0 = arith.constant 0 : i32
    %c0_i32_1 = arith.constant 0 : i32
    return %c0_i32, %c0_i32_0 : i32, i32
  }
  func.func @transform_4(%arg0: i32) -> (i32, i32) {
    %c0_i32 = arith.constant 0 : i32
    %c0_i32_0 = arith.constant 0 : i32
    %c0_i32_1 = arith.constant 0 : i32
    return %c0_i32, %c0_i32_0 : i32, i32
  }
  func.func @transform_5(%arg0: i32) -> (i32, i32) {
    %c0_i32 = arith.constant 0 : i32
    %c0_i32_0 = arith.constant 0 : i32
    %c0_i32_1 = arith.constant 0 : i32
    return %c0_i32, %c0_i32_0 : i32, i32
  }
  func.func @transform_6(%arg0: i32) -> (i32, i32) {
    %c0_i32 = arith.constant 0 : i32
    %c0_i32_0 = arith.constant 0 : i32
    %c0_i32_1 = arith.constant 0 : i32
    return %c0_i32, %c0_i32_0 : i32, i32
  }
  func.func @transform_7(%arg0: i32) -> (i32, i32) {
    %c0_i32 = arith.constant 0 : i32
    %c0_i32_0 = arith.constant 0 : i32
    %c0_i32_1 = arith.constant 0 : i32
    return %c0_i32, %c0_i32_0 : i32, i32
  }
}

</mosaic_0001>

<bundles_post_ra>
// kernel: tpu_custom_call.1
= control target key start
LH: loop header
LB: loop body
LE: loop exit
PB: predicated region body
PF: predicated region fallthrough
CT: control target
= control target key end

     0   :  { %13 = vsyncpa [#allocation4], 0  ;;  %s2150_s0 = inlined_call_operand.hbm [shape: f32[2,128,128], index: 0, kind: input, shape index: {}]   ;;  %s2151_s1 = inlined_call_operand.vmem [shape: f32[16,128], index: 1, kind: input, shape index: {}]   ;;  %s2152_s2 = inlined_call_operand.hbm [shape: f32[16,16], index: 2, kind: input, shape index: {}]   ;;  %s2153_s3 = inlined_call_operand.vmem [shape: f32[16,1], index: 3, kind: input, shape index: {}]   ;;  %s2154_s4 = inlined_call_operand.hbm [shape: f32[128,128], index: 4, kind: input, shape index: {}]   ;;  %s2155_s5 = inlined_call_operand.hbm [shape: f32[128,128], index: 5, kind: input, shape index: {}]   ;;  %s2156_s6 = inlined_call_operand.hbm [shape: f32[16,128], index: 6, kind: output, shape index: {0}]   ;;  %s2157_s7 = inlined_call_operand.hbm [shape: f32[16,128], index: 7, kind: output, shape index: {1}]  }
   0x1   :  { %15 = vsyncpa [#allocation4 + $0x1], 0 }
   0x2   :  { %16 = vsyncpa [#allocation7], 0 }
   0x3   :  { %17 = vsyncpa [#allocation10], 0 }
   0x4   :  { %18 = vsyncpa [#allocation5], 0 }
   0x5   :  { %19 = vsyncpa [#allocation13], 0  ;;  %s1902_s24 = smov 0   ;;  %s1904_s25 = smov 0  }
   0x6   :  { %s1906_s26 = smov 0   ;;  %s1908_s27 = smov 0  }
   0x7 LB: > { %s1921_s28 = sadd.s32 4294967295, %s1847_s27   ;;  %p45_p0 = scmp.ne.s32.totalorder %s1839_s25, %s1835_s24  ;;  %s1847_s27 = sphi %s1908_s27, %s2175_s27   ;;  %s1843_s26 = sphi %s1906_s26, %s2174_s26   ;;  %s1839_s25 = sphi %s1904_s25, %s2173_s25   ;;  %s1835_s24 = sphi %s1902_s24, %s2172_s24  }
   0x8   : > { %p2158_p1 = scmp.eq.s32.totalorder %s1921_s28, 0  ;;  %p1220_p2 = scmp.ge.s32.totalorder %s1847_s27, 1 }
   0x9   : > { %p203_p3 = scmp.lt.s32.totalorder %s1847_s27, 3  ;;  %s1849_s8 = smov [#allocation6]  }
   0xa   : > { %p1930_p5 = por %p2158_p1, %p45_p0  ;;  %s218_s9 = sshll.u32 %s1849_s8, 4  ;;  %s219_s9 = int_to_ptr.vmem [resolvable:$true] %s218_s9 }
   0xb   : > { %p1934_p6 = pnand %p1220_p2, %p203_p3  ;;  %s1850_s11 = smov [#allocation8]  }
   0xc   : > { %s2161_s29 = scalar_select %p1930_p5, 1, 0 }
   0xd   : > { %s2162_s30 = scalar_select %p1934_p6, 1, 0 }
   0xe   : > { %p1551_p7 = pneg %p1934_p6  ;;  %s234_s12 = sshll.u32 %s1850_s11, 4  ;;  %s235_s12 = int_to_ptr.vmem [resolvable:$true] %s234_s12 }
   0xf   : > { %s1851_s13 = smov [#allocation9]   ;;  %s1654_s15 = scalar_lea.vmem %s219_s9, 256 }
  0x10   : > { %p1942_p8 = pnand %p1551_p7, %p2158_p1  ;;  %s247_s14 = sshll.u32 %s1851_s13, 4  ;;  %s248_s14 = int_to_ptr.vmem [resolvable:$true] %s247_s14 }
  0x11   : > { %p1655_p10 = scmp.ne.s32.totalorder %s219_s9, %s1654_s15  ;;  %p1662_p13 = scmp.lt.s32.totalorder %s219_s9, %s219_s9 }
  0x12   : > { %p1645_p9 = pneg %p1942_p8  ;;  %p1663_p0 = scmp.lt.s32.totalorder %s1654_s15, %s1654_s15 }
  0x14   : > { %p1657_p11 = pnand %p1655_p10, %p1645_p9  ;;  %p1664_p2 = por %p1663_p0, %p1662_p13 }
  0x16   : > { %p1658_p12 = pneg %p1657_p11 }
  0x18   : > { %p1665_p3 = pnand %p1664_p2, %p1658_p12 }
  0x1a   : > { %1668 = shalt.err (!%p1665_p3)
}
  0x1b   : > { %s1852_s16 = smov 128   ;;  %s1853_s17 = smov 8  }
  0x1c   : > { %1554 = dma.hbm_to_vmem [thread:$0]  (!%p1942_p8), %s2152_s2, 256, %s219_s9, [#allocation7], %s1852_s16, %s1852_s16, %s1853_s17  }
  0x1d   : > { %s1680_s20 = scalar_lea.vmem %s235_s12, 2048  ;;  %p1688_p12 = scmp.lt.s32.totalorder %s235_s12, %s235_s12 }
  0x1e   : > { %p1681_p7 = scmp.ne.s32.totalorder %s235_s12, %s1680_s20  ;;  %p1689_p13 = scmp.lt.s32.totalorder %s1680_s20, %s1680_s20 }
  0x20   : > { %p1683_p10 = pnand %p1681_p7, %p1645_p9  ;;  %p1690_p0 = por %p1689_p13, %p1688_p12 }
  0x22   : > { %p1684_p11 = pneg %p1683_p10 }
  0x24   : > { %p1691_p2 = pnand %p1690_p0, %p1684_p11 }
  0x26   : > { %1694 = shalt.err (!%p1691_p2)
}
  0x27   : > { %1557 = dma.hbm_to_vmem [thread:$0]  (!%p1942_p8), %s2154_s4, 2048, %s235_s12, [#allocation7], %s1852_s16, %s1852_s16, %s1853_s17  }
  0x28   : > { %s1706_s23 = scalar_lea.vmem %s248_s14, 2048  ;;  %p1714_p12 = scmp.lt.s32.totalorder %s248_s14, %s248_s14 }
  0x29   : > { %p1707_p3 = scmp.ne.s32.totalorder %s248_s14, %s1706_s23  ;;  %p1715_p11 = scmp.lt.s32.totalorder %s1706_s23, %s1706_s23 }
  0x2b   : > { %p1709_p7 = pnand %p1707_p3, %p1645_p9  ;;  %p1716_p13 = por %p1715_p11, %p1714_p12 }
  0x2d   : > { %p1710_p10 = pneg %p1709_p7 }
  0x2f   : > { %p1717_p0 = pnand %p1716_p13, %p1710_p10 }
  0x31   : > { %1720 = shalt.err (!%p1717_p0)
}
  0x32   : > { %1560 = dma.hbm_to_vmem [thread:$0]  (!%p1942_p8), %s2155_s5, 2048, %s248_s14, [#allocation10], %s1852_s16, %s1852_s16, %s1853_s17  }
  0x33   : > { %s1982_s9 = sadd.s32 1, %s1847_s27   ;;  %s32_s11 = sadd.s32 1, %s1843_s26 }
  0x34   : > { %s29_s10 = ssub.s32 %s1847_s27, %s1982_s9  ;;  %p39_p2 = scmp.ne.s32.totalorder %s1843_s26, %s1839_s25 }
  0x35   : > { %p30_p9 = scmp.eq.s32.totalorder %s29_s10, 0  ;;  %p40_p3 = scmp.eq.s32.totalorder %s1847_s27, 0 }
  0x36   : > { %p1568_p7 = scmp.lt.s32.totalorder %s1847_s27, 2  ;;  %s261_s13 = sand.u32 1, %s1843_s26  }
  0x37   : > { %s1992_s12 = scalar_select %p30_p9, %s1843_s26, %s32_s11  }
  0x38   : > { %p41_p10 = por %p40_p3, %p39_p2  ;;  %s1225_s15 = sshll.u32 %s261_s13, 7 }
  0x39   : > { %s1259_s18 = sshll.u32 %s1847_s27, 11  ;;  %s265_s14 = scalar_lea.vmem [#allocation3], %s1225_s15 }
  0x3a   : > { %s1999_s21 = scalar_lea.hbm %s2150_s0, %s1259_s18  ;;  %s272_s22 = sshll.u32 %s265_s14, 4  ;;  %s2001_s22 = int_to_ptr.vmem [resolvable:$true] %s272_s22 }
  0x3b   : > { %p2003_p8 = pnand %p1568_p7, %p41_p10  ;;  %s2007_s24 = scalar_lea.sflag [#allocation4], %s261_s13 }
  0x3c   : > { %s1721_s27 = scalar_lea.hbm %s1999_s21, 2048  ;;  %s1726_s11 = scalar_lea.hbm %s2150_s0, 4096 }
  0x3d   : > { %p1722_p12 = scmp.ne.s32.totalorder %s1999_s21, %s1721_s27  ;;  %p1723_p11 = pneg %p2003_p8 }
  0x3e   : > { %p1727_p9 = scmp.lt.s32.totalorder %s1999_s21, %s2150_s0  ;;  %p1728_p2 = scmp.lt.s32.totalorder %s1726_s11, %s1721_s27 }
  0x3f   : > { %p1724_p13 = pnand %p1723_p11, %p1722_p12 }
  0x40   : > { %p1729_p3 = por %p1728_p2, %p1727_p9 }
  0x41   : > { %p1725_p0 = pneg %p1724_p13 }
  0x43   : > { %p1730_p7 = pnand %p1729_p3, %p1725_p0 }
  0x45   : > { %1733 = shalt.err (!%p1730_p7)
}
  0x46   : > { %s1734_s13 = scalar_lea.vmem %s2001_s22, 2048  ;;  %s1854_s19 = smov [#allocation3]  }
  0x47   : > { %p1735_p10 = scmp.ne.s32.totalorder %s2001_s22, %s1734_s13  ;;  %s1739_s20 = sshll.u32 %s1854_s19, 4  ;;  %s1740_s20 = int_to_ptr.vmem [resolvable:$false] %s1739_s20 }
  0x48   : > { %s1741_s14 = scalar_lea.vmem %s1740_s20, 4096  ;;  %p1742_p13 = scmp.lt.s32.totalorder %s2001_s22, %s1740_s20 }
  0x49   : > { %p1737_p4 = pnand %p1735_p10, %p1723_p11  ;;  %p1743_p1 = scmp.lt.s32.totalorder %s1741_s14, %s1734_s13 }
  0x4b   : > { %p1738_p12 = pneg %p1737_p4  ;;  %p1744_p5 = por %p1743_p1, %p1742_p13 }
  0x4d   : > { %p1745_p6 = pnand %p1744_p5, %p1738_p12 }
  0x4f   : > { %1748 = shalt.err (!%p1745_p6)
}
  0x50   : > { %1564 = dma.hbm_to_vmem [thread:$0]  (!%p2003_p8), %s1999_s21, 2048, %s2001_s22, %s2007_s24, %s1852_s16, %s1852_s16, %s1853_s17  }
  0x51   : > { %p2165_p4 = scmp.ne.s32.totalorder %s2162_s30, 0 }
  0x52   : > { %s286_s27 = sand.u32 (!%p2165_p4), 1, %s1839_s25   ;;  %p2166_p1 = scmp.ne.s32.totalorder (!%p2165_p4), %s2161_s29, 0 }
  0x53   : > { %284 = sbr.rel (%p2165_p4) target bundleno = 2253 (0x8cd), region = 44  ;;  %s1229_s8 = sshll.u32 (!%p2165_p4), %s286_s27, 7 }
  0x54   : > { %s287_s10 = scalar_lea.sflag (!%p2165_p4), [#allocation4], %s286_s27  ;;  %s2034_s11 = scalar_lea.vmem (!%p2165_p4), [#allocation3], %s1229_s8 }
  0x58   : > { %1814 = dma.done.wait (%p2166_p1), %s287_s10, 2048  }
  0x59   : > { %1816 = vsyncadd (%p2166_p1), %s287_s10, 4294965248  ;;  %p2167_p5 = scmp.eq.s32.totalorder %s1921_s28, 0 }
  0x5b   : > { %1818 = dma.done.wait (%p2167_p5), [#allocation7], 2304   ;;  %p2168_p6 = pmov %p2167_p5 }
  0x5c   : > { %p2169_p8 = pmov %p2167_p5 }
  0x5d   : > { %1820 = vsyncadd (%p2168_p6), [#allocation7], 4294964992 }
  0x5e   : > { %1822 = dma.done.wait (%p2169_p8), [#allocation10], 2048   ;;  %p2170_p11 = pmov %p2167_p5 }
  0x5f   : > { %p2171_p0 = scmp.ne.s32.totalorder %s1921_s28, 0 }
  0x60   : > { %1824 = vsyncadd (%p2170_p11), [#allocation10], 4294965248 }
  0x61   : > { %331 = sbr.rel (%p2171_p0) target bundleno = 106 (0x6a), region = 64 }
  0x66   : > { %v332_v0 = vld [vmem:[%s2151_s1] sm:$0xff]  ;;  %v333_v1 = vld [vmem:[%s2151_s1 + $0x8] sm:$0xff]  ;;  %v1855_v2 = vmov 0.0  }
  0x67   : > { %334 = vst [vmem:[#allocation2] sm:$0xff] %v332_v0  ;;  %336 = vst [vmem:[#allocation11] sm:$0xff] %v332_v0 }
  0x68   : > { %335 = vst [vmem:[#allocation2 + $0x8] sm:$0xff] %v333_v1  ;;  %337 = vst [vmem:[#allocation11 + $0x8] sm:$0xff] %v333_v1 }
  0x69   : > { %338 = vst [vmem:[#allocation12] sm:$0xff] %v1855_v2  ;;  %339 = vst [vmem:[#allocation12 + $0x8] sm:$0xff] %v1855_v2 }
  0x6a PF: > { %v357_v3 = vld [vmem:[%s2034_s11 + $0x78] sm:$0xff]  ;;  %v356_v4 = vld [vmem:[%s2034_s11 + $0x70] sm:$0xff]  ;;  %v355_v5 = vld [vmem:[%s2034_s11 + $0x68] sm:$0xff]  ;;  %vm435_vm0 = vcmask 130048   ;;  %v628_v1 = vlaneseq  ;;  %p1252_p9 = scmp.ne.s32.totalorder %s1921_s28, 1 }
  0x6b   : > { %1354 = vmatprep.subr.mxu0 %v357_v3  ;;  %v354_v6 = vld [vmem:[%s2034_s11 + $0x60] sm:$0xff]  ;;  %v353_v8 = vld [vmem:[%s2034_s11 + $0x58] sm:$0xff]  ;;  %v352_v9 = vld [vmem:[%s2034_s11 + $0x50] sm:$0xff] }
  0x6c   : > { %1355 = vmatpush3.msra.mxu0 %v357_v3  ;;  %v351_v10 = vld [vmem:[%s2034_s11 + $0x48] sm:$0xff]  ;;  %v350_v11 = vld [vmem:[%s2034_s11 + $0x40] sm:$0xff]  ;;  %v349_v12 = vld [vmem:[%s2034_s11 + $0x38] sm:$0xff]  ;;  %v629_v2 = vand.u32 127, %v628_v1  ;;  %v1856_v3 = vmov -1e+30  }
  0x6d   : > { %1356 = vmatprep.subr.mxu0 %v356_v4  ;;  %v348_v13 = vld [vmem:[%s2034_s11 + $0x30] sm:$0xff]  ;;  %v347_v14 = vld [vmem:[%s2034_s11 + $0x28] sm:$0xff]  ;;  %v346_v15 = vld [vmem:[%s2034_s11 + $0x20] sm:$0xff] }
  0x6e   : > { %1357 = vmatpush3.msra.mxu0 %v356_v4  ;;  %v340_v7 = vld [vmem:[#allocation2] sm:$0xff]  ;;  %v345_v16 = vld [vmem:[%s2034_s11 + $0x18] sm:$0xff]  ;;  %v343_v18 = vld [vmem:[%s2034_s11 + $0x8] sm:$0xff]  ;;  %vm630_vm1 = vcmp.lt.s32.totalorder %v629_v2, 8 }
  0x6f   : > { %1358 = vmatprep.subr.mxu0 %v355_v5  ;;  %1386 = vmatprep.mubr.f32.mxu0 %v340_v7  ;;  %v344_v17 = vld [vmem:[%s2034_s11 + $0x10] sm:$0xff]  ;;  %v342_v19 = vld [vmem:[%s2034_s11] sm:$0xff]  ;;  %v341_v20 = vld [vmem:[#allocation2 + $0x8] sm:$0xff]  ;;  %v631_v4 = vsel %vm630_vm1, 0.0, %v1856_v3 }
  0x70   : > { %1359 = vmatpush3.msra.mxu0 %v355_v5  ;;  %v433_v21 = vld [vmem:[#allocation6] sm:$0xff]  ;;  %v534_v22 = vld [vmem:[#allocation8 + $0x78] sm:$0xff]  ;;  %v532_v24 = vld [vmem:[#allocation8 + $0x68] sm:$0xff] }
  0x71   : > { %1360 = vmatprep.subr.mxu0 %v354_v6  ;;  %v533_v23 = vld [vmem:[#allocation8 + $0x70] sm:$0xff]  ;;  %1396 = vmatprep.subr.mxu1 %v534_v22  ;;  %v531_v25 = vld [vmem:[#allocation8 + $0x60] sm:$0xff]  ;;  %v530_v26 = vld [vmem:[#allocation8 + $0x58] sm:$0xff] }
  0x72   : > { %1361 = vmatpush3.msra.mxu0 %v354_v6  ;;  %1397 = vmatpush3.msra.mxu1 %v534_v22  ;;  %v529_v27 = vld [vmem:[#allocation8 + $0x50] sm:$0xff]  ;;  %v528_v28 = vld [vmem:[#allocation8 + $0x48] sm:$0xff]  ;;  %v527_v29 = vld [vmem:[#allocation8 + $0x40] sm:$0xff] }
  0x73   : > { %1362 = vmatprep.subr.mxu0 %v353_v8  ;;  %1398 = vmatprep.subr.mxu1 %v533_v23  ;;  %v526_v30 = vld [vmem:[#allocation8 + $0x38] sm:$0xff]  ;;  %v525_v31 = vld [vmem:[#allocation8 + $0x30] sm:$0xff]  ;;  %v524_v32 = vld [vmem:[#allocation8 + $0x28] sm:$0xff] }
  0x74   : > { %1363 = vmatpush3.msra.mxu0 %v353_v8  ;;  %1399 = vmatpush3.msra.mxu1 %v533_v23  ;;  %v523_v33 = vld [vmem:[#allocation8 + $0x20] sm:$0xff]  ;;  %v522_v34 = vld [vmem:[#allocation8 + $0x18] sm:$0xff]  ;;  %v521_v35 = vld [vmem:[#allocation8 + $0x10] sm:$0xff]  ;;  %v1857_v23 = vmov 0  }
  0x75   : > { %1364 = vmatprep.subr.mxu0 %v352_v9  ;;  %1400 = vmatprep.subr.mxu1 %v532_v24  ;;  %v434_v38 = vld [vmem:[#allocation6 + $0x8] sm:$0xff]  ;;  %v520_v39 = vld [vmem:[#allocation8 + $0x8] sm:$0xff]  ;;  %v519_v40 = vld [vmem:[#allocation8] sm:$0xff] }
  0x76   : > { %1365 = vmatpush3.msra.mxu0 %v352_v9  ;;  %1401 = vmatpush3.msra.mxu1 %v532_v24  ;;  %v550_v41 = vld [vmem:[#allocation9 + $0x78] sm:$0xff]  ;;  %v549_v42 = vld [vmem:[#allocation9 + $0x70] sm:$0xff]  ;;  %v548_v43 = vld [vmem:[#allocation9 + $0x68] sm:$0xff] }
  0x77   : > { %1366 = vmatprep.subr.mxu0 %v351_v10  ;;  %1402 = vmatprep.subr.mxu1 %v531_v25  ;;  %v547_v44 = vld [vmem:[#allocation9 + $0x60] sm:$0xff]  ;;  %v546_v45 = vld [vmem:[#allocation9 + $0x58] sm:$0xff]  ;;  %v545_v46 = vld [vmem:[#allocation9 + $0x50] sm:$0xff] }
  0x78   : > { %1367 = vmatpush3.msra.mxu0 %v351_v10  ;;  %1403 = vmatpush3.msra.mxu1 %v531_v25  ;;  %v544_v47 = vld [vmem:[#allocation9 + $0x48] sm:$0xff]  ;;  %v543_v48 = vld [vmem:[#allocation9 + $0x40] sm:$0xff]  ;;  %v542_v49 = vld [vmem:[#allocation9 + $0x38] sm:$0xff] }
  0x79   : > { %1368 = vmatprep.subr.mxu0 %v350_v11  ;;  %1404 = vmatprep.subr.mxu1 %v530_v26  ;;  %v541_v50 = vld [vmem:[#allocation9 + $0x30] sm:$0xff]  ;;  %v540_v51 = vld [vmem:[#allocation9 + $0x28] sm:$0xff]  ;;  %v539_v52 = vld [vmem:[#allocation9 + $0x20] sm:$0xff] }
  0x7a   : > { %1369 = vmatpush3.msra.mxu0 %v350_v11  ;;  %1405 = vmatpush3.msra.mxu1 %v530_v26  ;;  %v538_v55 = vld [vmem:[#allocation9 + $0x18] sm:$0xff]  ;;  %v537_v56 = vld [vmem:[#allocation9 + $0x10] sm:$0xff]  ;;  %v536_v57 = vld [vmem:[#allocation9 + $0x8] sm:$0xff] }
  0x7b   : > { %1370 = vmatprep.subr.mxu0 %v349_v12  ;;  %1406 = vmatprep.subr.mxu1 %v529_v27  ;;  %v535_v58 = vld [vmem:[#allocation9] sm:$0xff]  ;;  %v518_v24 = vld [vmem:[%s2153_s3 + $0x8] sm:$0xff] }
  0x7c   : > { %1371 = vmatpush3.msra.mxu0 %v349_v12  ;;  %1407 = vmatpush3.msra.mxu1 %v529_v27  ;;  %v517_v27 = vld [vmem:[%s2153_s3] sm:$0xff] }
  0x7d   : > { %1372 = vmatprep.subr.mxu0 %v348_v13  ;;  %1408 = vmatprep.subr.mxu1 %v528_v28 }
  0x7e   : > { %1373 = vmatpush3.msra.mxu0 %v348_v13  ;;  %1409 = vmatpush3.msra.mxu1 %v528_v28 }
  0x7f   : > { %1374 = vmatprep.subr.mxu0 %v347_v14  ;;  %1410 = vmatprep.subr.mxu1 %v527_v29 }
  0x80   : > { %1375 = vmatpush3.msra.mxu0 %v347_v14  ;;  %1411 = vmatpush3.msra.mxu1 %v527_v29 }
  0x81   : > { %1376 = vmatprep.subr.mxu0 %v346_v15  ;;  %1412 = vmatprep.subr.mxu1 %v526_v30 }
  0x82   : > { %1377 = vmatpush3.msra.mxu0 %v346_v15  ;;  %1413 = vmatpush3.msra.mxu1 %v526_v30 }
  0x83   : > { %1378 = vmatprep.subr.mxu0 %v345_v16  ;;  %1414 = vmatprep.subr.mxu1 %v525_v31 }
  0x84   : > { %1379 = vmatpush3.msra.mxu0 %v345_v16  ;;  %1415 = vmatpush3.msra.mxu1 %v525_v31 }
  0x85   : > { %1380 = vmatprep.subr.mxu0 %v344_v17  ;;  %1416 = vmatprep.subr.mxu1 %v524_v32 }
  0x86   : > { %1381 = vmatpush3.msra.mxu0 %v344_v17  ;;  %1417 = vmatpush3.msra.mxu1 %v524_v32 }
  0x87   : > { %1382 = vmatprep.subr.mxu0 %v343_v18  ;;  %1418 = vmatprep.subr.mxu1 %v523_v33 }
  0x88   : > { %1383 = vmatpush3.msra.mxu0 %v343_v18  ;;  %1419 = vmatpush3.msra.mxu1 %v523_v33 }
  0x89   : > { %1384 = vmatprep.subr.mxu0 %v342_v19  ;;  %1420 = vmatprep.subr.mxu1 %v522_v34 }
  0x8a   : > { %1385 = vmatpush3.msra.mxu0 %v342_v19  ;;  %1421 = vmatpush3.msra.mxu1 %v522_v34 }
  0x8b   : > { %1387 = vmatmul.mubr.f32.vlgmr.msra.gmra.mxu0 %v341_v20  ;;  %1422 = vmatprep.subr.mxu1 %v521_v35 }
  0x8c   : > { %1393 = vmatprep.mubr.msk.f32.mxu0 %vm435_vm0, %v433_v21  ;;  %1423 = vmatpush3.msra.mxu1 %v521_v35 }
  0x8d   : > { %1424 = vmatprep.subr.mxu1 %v520_v39  ;;  %1621 = vset.pattern.permute.xlu0 %v1857_v23 }
  0x8e   : > { %1425 = vmatpush3.msra.mxu1 %v520_v39  ;;  %1622 = vset.pattern.permute.xlu1 %v1857_v23  ;;  %v1054_v23 = vld [vmem:[#allocation11 + $0x8] sm:$0xff] }
  0x8f   : > { %1426 = vmatprep.subr.mxu1 %v519_v40 }
  0x90   : > { %1427 = vmatpush3.msra.mxu1 %v519_v40 }
 0x14b   : > { %v1388_v36 = vpop.f32.mrf.mxu0 }
 0x14c   : > { %1389 = vmatprep.subr.mxu0 %v1388_v36 }
 0x14d   : > { %v424_v37 = vpop.f32.mrf.mxu0  ;;  %1390 = vmatpush3.msra.mxu0 %v1388_v36 }
 0x14e   : > { %1391 = vmatprep.subr.mxu0 %v424_v37 }
 0x14f   : > { %1392 = vmatpush3.msra.mxu0 %v424_v37 }
 0x150   : > { %1394 = vmatmul.mubr.msk.f32.vlgmr.msra.gmra.mxu0 %vm435_vm0, %v434_v38  ;;  %1431 = vmatprep.subr.mxu0 %v550_v41 }
 0x151   : > { %1432 = vmatpush3.msra.mxu0 %v550_v41 }
 0x152   : > { %1433 = vmatprep.subr.mxu0 %v549_v42 }
 0x153   : > { %1434 = vmatpush3.msra.mxu0 %v549_v42 }
 0x154   : > { %1435 = vmatprep.subr.mxu0 %v548_v43 }
 0x155   : > { %1436 = vmatpush3.msra.mxu0 %v548_v43 }
 0x156   : > { %1437 = vmatprep.subr.mxu0 %v547_v44 }
 0x157   : > { %1438 = vmatpush3.msra.mxu0 %v547_v44 }
 0x158   : > { %1439 = vmatprep.subr.mxu0 %v546_v45 }
 0x159   : > { %1440 = vmatpush3.msra.mxu0 %v546_v45 }
 0x15a   : > { %1441 = vmatprep.subr.mxu0 %v545_v46 }
 0x15b   : > { %1442 = vmatpush3.msra.mxu0 %v545_v46 }
 0x15c   : > { %1443 = vmatprep.subr.mxu0 %v544_v47 }
 0x15d   : > { %1444 = vmatpush3.msra.mxu0 %v544_v47 }
 0x15e   : > { %1445 = vmatprep.subr.mxu0 %v543_v48 }
 0x15f   : > { %1446 = vmatpush3.msra.mxu0 %v543_v48 }
 0x160   : > { %1447 = vmatprep.subr.mxu0 %v542_v49 }
 0x161   : > { %1448 = vmatpush3.msra.mxu0 %v542_v49 }
 0x162   : > { %1449 = vmatprep.subr.mxu0 %v541_v50 }
 0x163   : > { %1450 = vmatpush3.msra.mxu0 %v541_v50 }
 0x164   : > { %1451 = vmatprep.subr.mxu0 %v540_v51 }
 0x165   : > { %1452 = vmatpush3.msra.mxu0 %v540_v51 }
 0x166   : > { %1453 = vmatprep.subr.mxu0 %v539_v52 }
 0x167   : > { %1454 = vmatpush3.msra.mxu0 %v539_v52 }
 0x168   : > { %1455 = vmatprep.subr.mxu0 %v538_v55 }
 0x169   : > { %1456 = vmatpush3.msra.mxu0 %v538_v55 }
 0x16a   : > { %1457 = vmatprep.subr.mxu0 %v537_v56 }
 0x16b   : > { %1458 = vmatpush3.msra.mxu0 %v537_v56 }
 0x16c   : > { %1459 = vmatprep.subr.mxu0 %v536_v57 }
 0x16d   : > { %1460 = vmatpush3.msra.mxu0 %v536_v57 }
 0x16e   : > { %1461 = vmatprep.subr.mxu0 %v535_v58 }
 0x16f   : > { %1462 = vmatpush3.msra.mxu0 %v535_v58 }
 0x210   : > { %v2074_v53 = vpop.f32.mrf.mxu0 }
 0x212   : > { %v2076_v54 = vpop.f32.mrf.mxu0 }
 0x213   : > { %1428 = vmatprep.mubr.f32.mxu1 %v2076_v54 }
 0x214   : > { %1429 = vmatmul.mubr.f32.vlgmr.msra.gmra.mxu1 %v2074_v53 }
 0x2d4   : > { %v1430_v59 = vpop.f32.mrf.mxu1 }
 0x2d5   : > { %v623_v60 = vadd.f32 %v1430_v59, %v2074_v53 }
 0x2d6   : > { %v617_v61 = vpop.f32.mrf.mxu1 }
 0x2d7   : > { %v618_v62 = vadd.f32 %v617_v61, %v2076_v54  ;;  %v627_v0 = vmax.f32 %v623_v60, 0.0 }
 0x2d9   : > { %v626_v63 = vmax.f32 %v618_v62, 0.0 }
 0x2db   : > { %1463 = vmatprep.mubr.f32.mxu0 %v626_v63 }
 0x2dc   : > { %1464 = vmatmul.mubr.f32.vlgmr.msra.gmra.mxu0 %v627_v0 }
 0x39c   : > { %v1465_v5 = vpop.f32.mrf.mxu0 }
 0x39d   : > { %v704_v6 = vadd.f32 %v1465_v5, %v631_v4 }
 0x39e   : > { %v698_v7 = vpop.f32.mrf.mxu0 }
 0x39f   : > { %709 = vmax.xlane.f32.xlu0 %v704_v6  ;;  %v699_v8 = vadd.f32 %v698_v7, %v631_v4 }
 0x3a3   : > { %707 = vmax.xlane.f32.xlu0 %v699_v8 }
 0x428   : > { %v710_v9 = vpop.xlane.xlu0 %709 }
 0x429   : > { %v712_v10 = vsub.f32 %v704_v6, %v710_v9 }
 0x42b   : > { %v715_v11 = vmul.f32 1.442695, %v712_v10 }
 0x42c   : > { %v708_v12 = vpop.xlane.xlu0 %707 }
 0x42d   : > { %1623 = vpow2.f32 %v715_v11  ;;  %v711_v13 = vsub.f32 %v699_v8, %v708_v12 }
 0x42f   : > { %v713_v14 = vmul.f32 1.442695, %v711_v13 }
 0x431   : > { %1625 = vpow2.f32 %v713_v14 }
 0x43a   : > { %v1624_v15 = vpop.eup %1623 }
 0x43b   : > { %719 = vadd.xlane.f32.xlu1 %v1624_v15 }
 0x43e   : > { %v1626_v16 = vpop.eup %1625 }
 0x43f   : > { %717 = vadd.xlane.f32.xlu1 %v1626_v16 }
 0x4c4   : > { %v720_v17 = vpop.xlane.xlu1 %719 }
 0x4c5   : > { %1627 = vrcp.f32 %v720_v17 }
 0x4c8   : > { %v718_v18 = vpop.xlane.xlu1 %717 }
 0x4c9   : > { %1629 = vrcp.f32 %v718_v18 }
 0x4d2   : > { %v1628_v19 = vpop.eup %1627 }
 0x4d3   : > { %v2082_v20 = vmul.f32 %v1628_v19, %v1624_v15 }
 0x4d5   : > { %729 = vadd.xlane.f32.xlu0 %v2082_v20 }
 0x4d6   : > { %v1630_v21 = vpop.eup %1629 }
 0x4d7   : > { %v725_v22 = vmul.f32 %v1630_v21, %v1626_v16 }
 0x4d9   : > { %727 = vadd.xlane.f32.xlu1 %v725_v22 }
 0x55e   : > { %v730_v25 = vpop.xlane.xlu0 %729 }
 0x55f   : > { %v732_v26 = vmul.f32 %v730_v25, %v518_v24 }
 0x561   : > { %1631 = vrcp.f32 %v732_v26  ;;  %v1071_v26 = vld [vmem:[#allocation12] sm:$0xff] }
 0x562   : > { %v728_v28 = vpop.xlane.xlu1 %727 }
 0x563   : > { %v731_v29 = vmul.f32 %v728_v28, %v517_v27 }
 0x565   : > { %1633 = vrcp.f32 %v731_v29 }
 0x56e   : > { %v1632_v30 = vpop.eup %1631 }
 0x56f   : > { %v738_v31 = vmul.f32 %v1632_v30, %v518_v24 }
 0x571   : > { %746 = vperm.xlu0 %1621, %v738_v31   ;;  %v1053_v31 = vld [vmem:[#allocation11] sm:$0xff] }
 0x572   : > { %v1634_v32 = vpop.eup %1633 }
 0x573   : > { %v737_v33 = vmul.f32 %v1634_v32, %v517_v27 }
 0x575   : > { %741 = vperm.xlu1 %1622, %v737_v33  }
 0x59e   : > { %751 = vxpose.xlu1.b32.start [1/2] (short) %v725_v22, 128 }
 0x5a2   : > { %752 = vxpose.xlu1.b32.end [2/2] (short) %v2082_v20, 128 }
 0x5ec   : > { %v747_v34 = vpop.permute.xlu0 %746 }
 0x5ed   : > { %v750_v35 = vmul.f32 %v2074_v53, %v747_v34 }
 0x5ef   : > { %1466 = vmatprep.subr.mxu1 %v750_v35 }
 0x5f0   : > { %v742_v36 = vpop.permute.xlu1 %741  ;;  %1467 = vmatpush3.msra.mxu1 %v750_v35  ;;  %v1072_v35 = vld [vmem:[#allocation12 + $0x8] sm:$0xff] }
 0x5f1   : > { %v749_v37 = vmul.f32 %v742_v36, %v2076_v54 }
 0x5f3   : > { %1468 = vmatprep.subr.mxu1 %v749_v37 }
 0x5f4   : > { %1469 = vmatpush3.msra.mxu1 %v749_v37 }
 0x61a   : > { %v767_v38 = vpop.trf.xlu1 }
 0x61b   : > { %1470 = vmatprep.mubr.msk.f32.mxu1 %vm435_vm0, %v767_v38 }
 0x61e   : > { %v768_v39 = vpop.trf.xlu1 }
 0x61f   : > { %1471 = vmatmul.mubr.msk.f32.vlgmr.msra.gmra.mxu1 %vm435_vm0, %v768_v39 }
 0x622   : > { %v769_v40 = vpop.trf.xlu1 }
 0x623   : > { %1473 = vmatprep.mubr.msk.f32.mxu1 %vm435_vm0, %v769_v40 }
 0x626   : > { %v770_v41 = vpop.trf.xlu1 }
 0x627   : > { %1474 = vmatmul.mubr.msk.f32.gmra.mxu1 %vm435_vm0, %v770_v41 }
 0x62a   : > { %v771_v42 = vpop.trf.xlu1 }
 0x62b   : > { %1476 = vmatprep.mubr.msk.f32.mxu1 %vm435_vm0, %v771_v42 }
 0x62e   : > { %v772_v43 = vpop.trf.xlu1 }
 0x62f   : > { %1477 = vmatmul.mubr.msk.f32.gmra.mxu1 %vm435_vm0, %v772_v43 }
 0x632   : > { %v773_v44 = vpop.trf.xlu1 }
 0x633   : > { %1479 = vmatprep.mubr.msk.f32.mxu1 %vm435_vm0, %v773_v44 }
 0x636   : > { %v774_v45 = vpop.trf.xlu1 }
 0x637   : > { %1480 = vmatmul.mubr.msk.f32.gmra.mxu1 %vm435_vm0, %v774_v45 }
 0x63a   : > { %v775_v46 = vpop.trf.xlu1 }
 0x63b   : > { %1482 = vmatprep.mubr.msk.f32.mxu1 %vm435_vm0, %v775_v46 }
 0x63e   : > { %v776_v47 = vpop.trf.xlu1 }
 0x63f   : > { %1483 = vmatmul.mubr.msk.f32.gmra.mxu1 %vm435_vm0, %v776_v47 }
 0x642   : > { %v777_v48 = vpop.trf.xlu1 }
 0x643   : > { %1485 = vmatprep.mubr.msk.f32.mxu1 %vm435_vm0, %v777_v48 }
 0x646   : > { %v778_v49 = vpop.trf.xlu1 }
 0x647   : > { %1486 = vmatmul.mubr.msk.f32.gmra.mxu1 %vm435_vm0, %v778_v49 }
 0x64a   : > { %v779_v50 = vpop.trf.xlu1 }
 0x64b   : > { %1488 = vmatprep.mubr.msk.f32.mxu1 %vm435_vm0, %v779_v50 }
 0x64e   : > { %v780_v51 = vpop.trf.xlu1 }
 0x64f   : > { %1489 = vmatmul.mubr.msk.f32.gmra.mxu1 %vm435_vm0, %v780_v51 }
 0x652   : > { %v781_v52 = vpop.trf.xlu1 }
 0x653   : > { %1491 = vmatprep.mubr.msk.f32.mxu1 %vm435_vm0, %v781_v52 }
 0x656   : > { %v782_v55 = vpop.trf.xlu1 }
 0x657   : > { %1492 = vmatmul.mubr.msk.f32.gmra.mxu1 %vm435_vm0, %v782_v55 }
 0x658   : > { %1526 = vmatprep.mubr.f32.mxu1 %v725_v22 }
 0x6df   : > { %v1472_v56 = vpop.f32.mrf.mxu1 }
 0x6e1   : > { %v897_v57 = vpop.f32.mrf.mxu1 }
 0x6e7   : > { %v1475_v58 = vpop.f32.mrf.mxu1 }
 0x6e9   : > { %v907_v59 = vpop.f32.mrf.mxu1 }
 0x6ef   : > { %v1478_v60 = vpop.f32.mrf.mxu1 }
 0x6f1   : > { %v917_v61 = vpop.f32.mrf.mxu1 }
 0x6f7   : > { %v1481_v62 = vpop.f32.mrf.mxu1 }
 0x6f9   : > { %v927_v63 = vpop.f32.mrf.mxu1 }
 0x6ff   : > { %v1484_v0 = vpop.f32.mrf.mxu1 }
 0x701   : > { %v937_v1 = vpop.f32.mrf.mxu1 }
 0x707   : > { %v1487_v2 = vpop.f32.mrf.mxu1 }
 0x709   : > { %v947_v3 = vpop.f32.mrf.mxu1 }
 0x70f   : > { %v1490_v4 = vpop.f32.mrf.mxu1 }
 0x711   : > { %v957_v5 = vpop.f32.mrf.mxu1 }
 0x717   : > { %v1493_v6 = vpop.f32.mrf.mxu1 }
 0x718   : > { %1494 = vmatprep.subr.mxu1 %v1493_v6 }
 0x719   : > { %v967_v7 = vpop.f32.mrf.mxu1  ;;  %1495 = vmatpush3.msra.mxu1 %v1493_v6 }
 0x71a   : > { %1496 = vmatprep.subr.mxu1 %v967_v7 }
 0x71b   : > { %1497 = vmatpush3.msra.mxu1 %v967_v7 }
 0x71c   : > { %1498 = vmatprep.subr.mxu1 %v1490_v4 }
 0x71d   : > { %1499 = vmatpush3.msra.mxu1 %v1490_v4 }
 0x71e   : > { %1500 = vmatprep.subr.mxu1 %v957_v5 }
 0x71f   : > { %1501 = vmatpush3.msra.mxu1 %v957_v5 }
 0x720   : > { %1502 = vmatprep.subr.mxu1 %v1487_v2 }
 0x721   : > { %1503 = vmatpush3.msra.mxu1 %v1487_v2 }
 0x722   : > { %1504 = vmatprep.subr.mxu1 %v947_v3 }
 0x723   : > { %1505 = vmatpush3.msra.mxu1 %v947_v3 }
 0x724   : > { %1506 = vmatprep.subr.mxu1 %v1484_v0 }
 0x725   : > { %1507 = vmatpush3.msra.mxu1 %v1484_v0 }
 0x726   : > { %1508 = vmatprep.subr.mxu1 %v937_v1 }
 0x727   : > { %1509 = vmatpush3.msra.mxu1 %v937_v1 }
 0x728   : > { %1510 = vmatprep.subr.mxu1 %v1481_v62 }
 0x729   : > { %1511 = vmatpush3.msra.mxu1 %v1481_v62 }
 0x72a   : > { %1512 = vmatprep.subr.mxu1 %v927_v63 }
 0x72b   : > { %1513 = vmatpush3.msra.mxu1 %v927_v63 }
 0x72c   : > { %1514 = vmatprep.subr.mxu1 %v1478_v60 }
 0x72d   : > { %1515 = vmatpush3.msra.mxu1 %v1478_v60 }
 0x72e   : > { %1516 = vmatprep.subr.mxu1 %v917_v61 }
 0x72f   : > { %1517 = vmatpush3.msra.mxu1 %v917_v61 }
 0x730   : > { %1518 = vmatprep.subr.mxu1 %v1475_v58 }
 0x731   : > { %1519 = vmatpush3.msra.mxu1 %v1475_v58 }
 0x732   : > { %1520 = vmatprep.subr.mxu1 %v907_v59 }
 0x733   : > { %1521 = vmatpush3.msra.mxu1 %v907_v59 }
 0x734   : > { %1522 = vmatprep.subr.mxu1 %v1472_v56 }
 0x735   : > { %1523 = vmatpush3.msra.mxu1 %v1472_v56 }
 0x736   : > { %1524 = vmatprep.subr.mxu1 %v897_v57 }
 0x737   : > { %1525 = vmatpush3.msra.mxu1 %v897_v57 }
 0x738   : > { %1527 = vmatmul.mubr.f32.vlgmr.msra.gmra.mxu1 %v2082_v20 }
 0x7f8   : > { %v1528_v8 = vpop.f32.mrf.mxu1 }
 0x7f9   : > { %v1052_v9 = vadd.f32 %v1528_v8, %v2074_v53  ;;  %v1074_v15 = vmul.f32 %v1528_v8, %v1528_v8 }
 0x7fa   : > { %v1042_v10 = vpop.f32.mrf.mxu1 }
 0x7fb   : > { %1090 = vst [vmem:[#allocation2 + $0x8] sm:$0xff] %v1052_v9  ;;  %v1051_v11 = vadd.f32 %v1042_v10, %v2076_v54  ;;  %v1056_v12 = vmul.f32 %v1052_v9, %v1052_v9  ;;  %v1073_v13 = vmul.f32 %v1042_v10, %v1042_v10 }
 0x7fd   : > { %1089 = vst [vmem:[#allocation2] sm:$0xff] %v1051_v11  ;;  %1059 = vadd.xlane.f32.xlu1 %v1056_v12  ;;  %1075 = vadd.xlane.f32.xlu0 %v1073_v13  ;;  %v1055_v14 = vmul.f32 %v1051_v11, %v1051_v11 }
 0x801   : > { %1057 = vadd.xlane.f32.xlu0 %v1055_v14 }
 0x805   : > { %1077 = vadd.xlane.f32.xlu0 %v1074_v15 }
 0x886   : > { %v1060_v16 = vpop.xlane.xlu1 %1059  ;;  %v1076_v17 = vpop.xlane.xlu0 %1075 }
 0x887   : > { %v1062_v18 = vmax.f32 %v1060_v16, 1e-24  ;;  %v1079_v19 = vmax.f32 %v1076_v17, 1e-24 }
 0x889   : > { %1635 = vrsqrt.f32 %v1062_v18 }
 0x88a   : > { %1637 = vrsqrt.f32 %v1079_v19  ;;  %v1058_v53 = vpop.xlane.xlu0 %1057 }
 0x88b   : > { %v1061_v20 = vmax.f32 %v1058_v53, 1e-24 }
 0x88d   : > { %1639 = vrsqrt.f32 %v1061_v20 }
 0x88e   : > { %v1078_v21 = vpop.xlane.xlu0 %1077 }
 0x88f   : > { %v1080_v54 = vmax.f32 %v1078_v21, 1e-24 }
 0x891   : > { %1641 = vrsqrt.f32 %v1080_v54 }
 0x896   : > { %v1636_v22 = vpop.eup %1635 }
 0x897   : > { %v1638_v24 = vpop.eup %1637  ;;  %v1066_v25 = vmul.f32 %v1636_v22, %v1052_v9 }
 0x898   : > { %v1083_v27 = vmul.f32 %v1638_v24, %v1042_v10 }
 0x899   : > { %v1068_v28 = vadd.f32 %v1066_v25, %v1054_v23 }
 0x89a   : > { %v1640_v29 = vpop.eup %1639  ;;  %v1085_v30 = vadd.f32 %v1083_v27, %v1071_v26 }
 0x89b   : > { %1070 = vst [vmem:[#allocation11 + $0x8] sm:$0xff] %v1068_v28  ;;  %v1065_v32 = vmul.f32 %v1640_v29, %v1051_v11 }
 0x89c   : > { %1087 = vst [vmem:[#allocation12] sm:$0xff] %v1085_v30 }
 0x89d   : > { %v1067_v33 = vadd.f32 %v1065_v32, %v1053_v31 }
 0x89e   : > { %v1642_v34 = vpop.eup %1641 }
 0x89f   : > { %1069 = vst [vmem:[#allocation11] sm:$0xff] %v1067_v33  ;;  %v1084_v36 = vmul.f32 %v1642_v34, %v1528_v8  ;;  %1094 = sbr.rel (%p1252_p9) target bundleno = 2222 (0x8ae), region = 68 }
 0x8a1   : > { %v1086_v37 = vadd.f32 %v1084_v36, %v1072_v35 }
 0x8a3   : > { %1088 = vst [vmem:[#allocation12 + $0x8] sm:$0xff] %v1086_v37 }
 0x8a4   : > { %v1096_v39 = vld [vmem:[#allocation11 + $0x8] sm:$0xff]  ;;  %v1101_v40 = vld [vmem:[#allocation12] sm:$0xff] }
 0x8a5   : > { %v1098_v42 = vmul.f32 0.33333334, %v1096_v39  ;;  %v1103_v43 = vmul.f32 0.5, %v1101_v40 }
 0x8a6   : > { %v1095_v38 = vld [vmem:[#allocation11] sm:$0xff] }
 0x8a7   : > { %v1097_v41 = vmul.f32 0.33333334, %v1095_v38  ;;  %1100 = vst [vmem:[#allocation11 + $0x8] sm:$0xff] %v1098_v42  ;;  %1105 = vst [vmem:[#allocation12] sm:$0xff] %v1103_v43 }
 0x8a9   : > { %1099 = vst [vmem:[#allocation11] sm:$0xff] %v1097_v41 }
 0x8aa   : > { %v1102_v44 = vld [vmem:[#allocation12 + $0x8] sm:$0xff] }
 0x8ab   : > { %v1104_v45 = vmul.f32 0.5, %v1102_v44 }
 0x8ad   : > { %1106 = vst [vmem:[#allocation12 + $0x8] sm:$0xff] %v1104_v45 }
 0x8ae PF: > { %p1572_p2 = scmp.eq.s32.totalorder %s1921_s28, 1  ;;  %s1858_s15 = smov [#allocation11]  }
 0x8af   : > { %s1113_s18 = sshll.u32 %s1858_s15, 4  ;;  %s1114_s18 = int_to_ptr.vmem [resolvable:$true] %s1113_s18 }
 0x8b0   : > { %s1749_s13 = scalar_lea.vmem %s1114_s18, 256  ;;  %p1756_p12 = scmp.lt.s32.totalorder %s1114_s18, %s1114_s18 }
 0x8b1   : > { %p1750_p3 = scmp.ne.s32.totalorder %s1114_s18, %s1749_s13  ;;  %p1757_p13 = scmp.lt.s32.totalorder %s1749_s13, %s1749_s13 }
 0x8b3   : > { %p1751_p7 = pnand %p1750_p3, %p1572_p2  ;;  %p1758_p4 = por %p1757_p13, %p1756_p12 }
 0x8b5   : > { %p1752_p10 = pneg %p1751_p7 }
 0x8b7   : > { %p1759_p1 = pnand %p1758_p4, %p1752_p10 }
 0x8b9   : > { %1762 = shalt.err (!%p1759_p1)
}
 0x8ba   : > { %s1859_s19 = smov 128   ;;  %s1860_s20 = smov 8  }
 0x8bb   : > { %1544 = dma.vmem_to_hbm [thread:$0]  (%p1572_p2), %s1114_s18, 256, %s2156_s6, [#allocation5], %s1859_s19, %s1859_s19, %s1860_s20  }
 0x8bc   : > { %s1861_s8 = smov [#allocation12]  }
 0x8bd   : > { %s1126_s10 = sshll.u32 %s1861_s8, 4  ;;  %s1127_s10 = int_to_ptr.vmem [resolvable:$true] %s1126_s10 }
 0x8be   : > { %s1773_s11 = scalar_lea.vmem %s1127_s10, 256  ;;  %p1780_p11 = scmp.lt.s32.totalorder %s1127_s10, %s1127_s10 }
 0x8bf   : > { %p1774_p5 = scmp.ne.s32.totalorder %s1127_s10, %s1773_s11  ;;  %p1781_p0 = scmp.lt.s32.totalorder %s1773_s11, %s1773_s11 }
 0x8c1   : > { %p1775_p6 = pnand %p1774_p5, %p1572_p2  ;;  %p1782_p9 = por %p1781_p0, %p1780_p11 }
 0x8c3   : > { %p1776_p8 = pneg %p1775_p6 }
 0x8c5   : > { %p1783_p3 = pnand %p1782_p9, %p1776_p8 }
 0x8c7   : > { %1786 = shalt.err (!%p1783_p3)
}
 0x8c8   : > { %1546 = dma.vmem_to_hbm [thread:$0]  (%p1572_p2), %s1127_s10, 256, %s2157_s7, [#allocation13], %s1859_s19, %s1859_s19, %s1860_s20  }
 0x8c9   : > { %1826 = dma.done.wait (%p1572_p2), [#allocation5], 256  }
 0x8ca   : > { %1828 = vsyncadd (%p1572_p2), [#allocation5], 4294967040 }
 0x8cb   : > { %1830 = dma.done.wait (%p1572_p2), [#allocation13], 256  }
 0x8cc   : > { %1832 = vsyncadd (%p1572_p2), [#allocation13], 4294967040 }
 0x8cd PF: > { %p22_p7 = scmp.ge.s32.totalorder %s1982_s9, 4   ;;  %s2172_s24 = smov %s1839_s25 }
 0x8ce   : > { %s2173_s25 = smov %s1843_s26  ;;  %s2174_s26 = smov %s1992_s12 }
 0x8cf   : > { %s2175_s27 = smov %s1982_s9  ;;  %24 = sbr.rel (!%p22_p7) target bundleno = 7 (0x7), region = 109 }
 0x8d4   :  { %1146 = vsyncpa [#allocation4], 1 }
 0x8d5   :  { %1148 = vsyncpa [#allocation4 + $0x1], 1 }
 0x8d6   :  { %1149 = vsyncpa [#allocation7], 1 }
 0x8d7   :  { %1150 = vsyncpa [#allocation10], 1 }
 0x8d8   :  { %1151 = vsyncpa [#allocation5], 1 }
 0x8d9   :  { %1153 = vsyncpa [#allocation5 + $0x1], 1 }
 0x8da   :  { %1154 = vsyncpa [#allocation13], 1 }

</bundles_post_ra>
